<compile_context>
chip_gen: v7x
topology: tpu7x:2x2x1
jax: 0.10.0
libtpu: 0.0.40
codegen_flags: <defaults>
</compile_context>

<pallas_src>
import functools

import jax
import jax.numpy as jnp
from jax import lax
from jax.experimental import pallas as pl
from jax.experimental.pallas import tpu as pltpu

_LANES = 128
_MAX_TILE_ROWS = 1024        # 1024 x 128 f32 = 512 KiB per output tile
_FUSED_MAX_BYTES = 2 << 20   # single-launch fused path up to 2 MiB of output
_ACC_ROWS = 8                # per-core partial-max block is a full (8,128) vreg


def _cdiv(a: int, b: int) -> int:
    return -(-a // b)


def _round_up(a: int, b: int) -> int:
    return _cdiv(a, b) * b


def _horner(x, coefs):
    """sum_i coefs[i] * x**i via Horner; seeded to save one add."""
    if len(coefs) == 1:
        return jnp.zeros_like(x) + coefs[0]
    acc = coefs[-1] * x + coefs[-2]
    for c in reversed(coefs[:-2]):
        acc = acc * x + c
    return acc


# --------------------------------------------------------------------------
# Fused path (small / medium res): one launch, poly evaluated once per output
# element, max reduced in VMEM, normalized result stored.
# --------------------------------------------------------------------------
def _fused_kernel(coef_ref, o_ref, *, degree, res, total):
    coefs = [coef_ref[i] for i in range(degree + 1)]          # SMEM scalars

    rows = o_ref.shape[0]
    row = lax.broadcasted_iota(jnp.int32, (rows, _LANES), 0)
    col = lax.broadcasted_iota(jnp.int32, (rows, _LANES), 1)
    i = row * _LANES + col                                    # flat output index
    # cat([ramp, flip(ramp)])[i] == poly(x[min(i, total-1-i)]).  Pad positions
    # (i >= total, sliced off later) clamp to sample 0, which is a *valid*
    # sample, so the in-tile max reduction below stays exact.
    idx = jnp.maximum(jnp.minimum(i, total - 1 - i), 0)

    step = (1.0 / (res - 1)) if res > 1 else 0.0
    x = idx.astype(jnp.float32) * jnp.float32(step)
    ramp = _horner(x, coefs)

    inv_max = 1.0 / jnp.max(ramp)                             # one scalar divide
    o_ref[...] = ramp * inv_max


# --------------------------------------------------------------------------
# Large-res fallback: pass 1 = global max (dual-core partial maxima),
# pass 2 = recompute mirrored polynomial per tile, normalize, store.
# --------------------------------------------------------------------------
def _partial_max_kernel(coef_ref, m_ref, *, degree, res, tile_rows,
                        tiles_per_core):
    c = pl.program_id(0)          # "parallel" axis -> one per TensorCore on v7x
    k = pl.program_id(1)          # "arbitrary" reduction axis

    @pl.when(k == 0)
    def _():
        m_ref[...] = jnp.full((_ACC_ROWS, _LANES), -jnp.inf, jnp.float32)

    coefs = [coef_ref[i] for i in range(degree + 1)]

    tile = c * tiles_per_core + k
    base = tile * (tile_rows * _LANES)
    row = lax.broadcasted_iota(jnp.int32, (tile_rows, _LANES), 0)
    col = lax.broadcasted_iota(jnp.int32, (tile_rows, _LANES), 1)
    idx = base + row * _LANES + col
    valid = idx < res

    step = (1.0 / (res - 1)) if res > 1 else 0.0
    x = idx.astype(jnp.float32) * jnp.float32(step)
    ramp = _horner(x, coefs)
    ramp = jnp.where(valid, ramp, -jnp.inf)                   # mask tail padding
    m_ref[...] = jnp.maximum(m_ref[...], jnp.max(ramp))       # scalar broadcast


def _normalize_kernel(coef_ref, m_ref, o_ref, *, degree, res, tile_rows):
    k = pl.program_id(0)
    total = 2 * res

    coefs = [coef_ref[i] for i in range(degree + 1)]
    m = jnp.maximum(m_ref[0, 0], m_ref[_ACC_ROWS, 0])         # merge per-core maxima
    inv_max = 1.0 / m

    base = k * (tile_rows * _LANES)
    row = lax.broadcasted_iota(jnp.int32, (tile_rows, _LANES), 0)
    col = lax.broadcasted_iota(jnp.int32, (tile_rows, _LANES), 1)
    i = base + row * _LANES + col
    idx = jnp.maximum(jnp.minimum(i, total - 1 - i), 0)       # mirror (+pad clamp)

    step = (1.0 / (res - 1)) if res > 1 else 0.0
    x = idx.astype(jnp.float32) * jnp.float32(step)
    o_ref[...] = _horner(x, coefs) * inv_max


# --------------------------------------------------------------------------
# Wrapper
# --------------------------------------------------------------------------
def polynomial_forward(poly_parameters: jax.Array, res: int,
                       _force_two_pass: bool = False) -> jax.Array:
    """Equivalent of PolynomialModel(degree).forward(res). Returns (2*res,) f32."""
    degree = poly_parameters.shape[0] - 1
    coef = poly_parameters.astype(jnp.float32)
    total = 2 * res
    rows_out = _round_up(_cdiv(total, _LANES), 8)             # lane/sublane dense

    if (total * 4 <= _FUSED_MAX_BYTES) and not _force_two_pass:
        # ---- fused single-launch path ------------------------------------
        out2d = pl.pallas_call(
            functools.partial(_fused_kernel, degree=degree, res=res, total=total),
            out_shape=jax.ShapeDtypeStruct((rows_out, _LANES), jnp.float32),
            in_specs=[pl.BlockSpec(memory_space=pltpu.MemorySpace.SMEM)],
            out_specs=pl.BlockSpec(memory_space=pltpu.MemorySpace.VMEM),
        )(coef)
    else:
        # ---- pass 1: global max over linspace(0,1,res), split on 2 cores --
        rows1 = _cdiv(res, _LANES)
        t1 = min(_MAX_TILE_ROWS, _round_up(rows1, 8))
        n_tiles = _cdiv(rows1, t1)
        tiles_per_core = _cdiv(n_tiles, 2)
        partial_max = pl.pallas_call(
            functools.partial(_partial_max_kernel, degree=degree, res=res,
                              tile_rows=t1, tiles_per_core=tiles_per_core),
            out_shape=jax.ShapeDtypeStruct((2 * _ACC_ROWS, _LANES), jnp.float32),
            grid=(2, tiles_per_core),
            in_specs=[pl.BlockSpec(memory_space=pltpu.MemorySpace.SMEM)],
            out_specs=pl.BlockSpec((_ACC_ROWS, _LANES), lambda c, k: (c, 0)),
            compiler_params=pltpu.CompilerParams(
                dimension_semantics=("parallel", "arbitrary")),
        )(coef)

        # ---- pass 2: mirrored, normalized output (lane-dense writes) ------
        t2 = min(_MAX_TILE_ROWS, rows_out)
        grid2 = _cdiv(rows_out, t2)
        out2d = pl.pallas_call(
            functools.partial(_normalize_kernel, degree=degree, res=res,
                              tile_rows=t2),
            out_shape=jax.ShapeDtypeStruct((rows_out, _LANES), jnp.float32),
            grid=(grid2,),
            in_specs=[
                pl.BlockSpec(memory_space=pltpu.MemorySpace.SMEM),   # coefficients
                pl.BlockSpec(memory_space=pltpu.MemorySpace.SMEM),   # partial maxima
            ],
            out_specs=pl.BlockSpec((t2, _LANES), lambda k: (k, 0)),
            compiler_params=pltpu.CompilerParams(
                dimension_semantics=("parallel",)),
        )(coef, partial_max)

    flat = out2d.reshape(-1)                                   # free bitcast
    if rows_out * _LANES == total:
        return flat                                            # no trailing copy
    return flat[:total]                                        # trim tail padding


def _reference(poly_parameters, res):
    x = jnp.linspace(0.0, 1.0, res, dtype=jnp.float32)
    ramp = x * 0 + poly_parameters[0]
    for i in range(1, poly_parameters.shape[0]):
        ramp = ramp + poly_parameters[i] * x ** i
    ramp = jnp.concatenate([ramp, ramp[::-1]])
    return ramp / jnp.max(ramp)


if __name__ == "__main__":
    degree = 3
    res = 128

    # deterministic "torch.rand(degree + 1)"-style init in [0, 1)
    key = jax.random.PRNGKey(0)
    poly_parameters = jax.random.uniform(key, (degree + 1,), dtype=jnp.float32)

    ref = _reference(poly_parameters, res)

    # fused single-launch path (the one used at this small resolution)
    out = jax.block_until_ready(polynomial_forward(poly_parameters, res))
    assert out.shape == (2 * res,)
    assert jnp.allclose(out, ref, atol=1e-5, rtol=1e-5)

    # also exercise the large-res two-pass fallback at the same small shape
    out2 = jax.block_until_ready(
        polynomial_forward(poly_parameters, res, _force_two_pass=True))
    assert out2.shape == (2 * res,)
    assert jnp.allclose(out2, ref, atol=1e-5, rtol=1e-5)

    print("KERNEL_OK")
</pallas_src>

<mosaic_0001>
module attributes {stable_mosaic.version = 11 : i64} {
  func.func @_fused_kernel(%arg0: memref<4xf32, #tpu.memory_space<smem>>, %arg1: memref<8x128xf32, #tpu.memory_space<vmem>>) attributes {dimension_semantics = [], scalar_prefetch = 0 : i64, scratch_operands = 0 : i64, tpu.core_type = #tpu.core_type<tc>} {
    %c0 = arith.constant 0 : index
    %0 = memref.load %arg0[%c0] : memref<4xf32, #tpu.memory_space<smem>>
    %c1 = arith.constant 1 : index
    %1 = memref.load %arg0[%c1] : memref<4xf32, #tpu.memory_space<smem>>
    %c2 = arith.constant 2 : index
    %2 = memref.load %arg0[%c2] : memref<4xf32, #tpu.memory_space<smem>>
    %c3 = arith.constant 3 : index
    %3 = memref.load %arg0[%c3] : memref<4xf32, #tpu.memory_space<smem>>
    %4 = tpu.iota {dimensions = array<i32: 0>} : vector<8x128xi32>
    %5 = tpu.iota {dimensions = array<i32: 1>} : vector<8x128xi32>
    %c128_i32 = arith.constant 128 : i32
    %6 = vector.broadcast %c128_i32 : i32 to vector<8x128xi32>
    %7 = arith.muli %4, %6 : vector<8x128xi32>
    %8 = arith.addi %7, %5 : vector<8x128xi32>
    %c255_i32 = arith.constant 255 : i32
    %9 = vector.broadcast %c255_i32 : i32 to vector<8x128xi32>
    %10 = arith.subi %9, %8 : vector<8x128xi32>
    %11 = arith.minsi %8, %10 : vector<8x128xi32>
    %c0_i32 = arith.constant 0 : i32
    %12 = vector.broadcast %c0_i32 : i32 to vector<8x128xi32>
    %13 = arith.maxsi %11, %12 : vector<8x128xi32>
    %14 = arith.sitofp %13 : vector<8x128xi32> to vector<8x128xf32>
    %cst = arith.constant 0.00787401571 : f32
    %15 = vector.broadcast %cst : f32 to vector<8x128xf32>
    %16 = arith.mulf %14, %15 : vector<8x128xf32>
    %17 = vector.broadcast %3 : f32 to vector<8x128xf32>
    %18 = arith.mulf %17, %16 : vector<8x128xf32>
    %19 = vector.broadcast %2 : f32 to vector<8x128xf32>
    %20 = arith.addf %18, %19 : vector<8x128xf32>
    %21 = arith.mulf %20, %16 : vector<8x128xf32>
    %22 = vector.broadcast %1 : f32 to vector<8x128xf32>
    %23 = arith.addf %21, %22 : vector<8x128xf32>
    %24 = arith.mulf %23, %16 : vector<8x128xf32>
    %25 = vector.broadcast %0 : f32 to vector<8x128xf32>
    %26 = arith.addf %24, %25 : vector<8x128xf32>
    %27 = vector.shape_cast %26 : vector<8x128xf32> to vector<1x8x128xf32>
    %cst_0 = arith.constant dense<0xFF800000> : vector<1xf32>
    %28 = vector.multi_reduction <maximumf>, %27, %cst_0 [1, 2] : vector<1x8x128xf32> to vector<1xf32>
    %29 = vector.shape_cast %28 : vector<1xf32> to vector<1x1x1xf32>
    %30 = vector.extract %29[0, 0, 0] : f32 from vector<1x1x1xf32>
    %cst_1 = arith.constant 1.000000e+00 : f32
    %31 = arith.divf %cst_1, %30 : f32
    %32 = vector.broadcast %31 : f32 to vector<8x128xf32>
    %33 = arith.mulf %26, %32 : vector<8x128xf32>
    %c0_2 = arith.constant 0 : index
    %c0_3 = arith.constant 0 : index
    %34 = vector.load %arg1[%c0_2, %c0_3] : memref<8x128xf32, #tpu.memory_space<vmem>>, vector<8x128xf32>
    tpu.vector_store %arg1[%c0_2, %c0_3], %33 {strides = array<i32>} : memref<8x128xf32, #tpu.memory_space<vmem>>, vector<8x128xf32>,
    return
  }
}

</mosaic_0001>

<bundles_post_ra>
// kernel: tpu_custom_call.1
= control target key start
LH: loop header
LB: loop body
LE: loop exit
PB: predicated region body
PF: predicated region fallthrough
CT: control target
= control target key end

     0   :  { %6 = vsyncpa [#allocation4], 0  ;;  %s162_s0 = inlined_call_operand.hbm [shape: f32[4], index: 0, kind: input, shape index: {}]   ;;  %s163_s1 = inlined_call_operand.hbm [shape: f32[8,128], index: 1, kind: output, shape index: {}]  }
   0x1   :  { %7 = vsyncpa [#allocation3], 0  ;;  %s90_s8 = scalar_lea.hbm %s162_s0, 16 }
   0x2   :  { %p91_p0 = scmp.ne.s32.totalorder %s162_s0, %s90_s8  ;;  %p94_p1 = scmp.lt.u32.totalorder %s90_s8, %s162_s0 }
   0x4   :  { %p96_p2 = pnand %p94_p1, %p91_p0 }
   0x6   :  { %99 = shalt.err (!%p96_p2)
}
   0x7   :  { %s126_s13 = smov [#allocation2]  }
   0x8   :  { %15 = dma.hbm_to_smem %s162_s0, 16, %s126_s13, [#allocation4]  }
   0x9   :  { %122 = dma.done.wait [#allocation4], 16  }
   0xa   :  { %123 = vsyncadd [#allocation4], 4294967280 }
   0xb   :  { %19 = sfence }
   0xc   :  { %v24_v0 = vlaneseq  ;;  %s79_s16 = sld [smem:[#allocation2 + $0x3]]  ;;  %s78_s17 = sld [smem:[#allocation2 + $0x2]] }
   0xd   :  { %s77_s18 = sld [smem:[#allocation2 + $0x1]]  ;;  %s20_s0 = sld [smem:[#allocation2]] }
   0xe   :  { %v25_v1 = vshrl.u32 %v24_v0, 7  ;;  %v27_v2 = vand.u32 127, %v24_v0  ;;  %s127_s20 = smov [#allocation5]  }
   0xf   :  { %s68_s21 = sshll.u32 %s127_s20, 4  ;;  %s69_s21 = int_to_ptr.vmem [resolvable:$true] %s68_s21 }
  0x10   :  { %v28_v3 = vmul.u32 128, %v25_v1  ;;  %s100_s23 = scalar_lea.vmem %s69_s21, 128  ;;  %p105_p4 = scmp.lt.s32.totalorder %s69_s21, %s69_s21 }
  0x11   :  { %p101_p3 = scmp.ne.s32.totalorder %s69_s21, %s100_s23  ;;  %p106_p5 = scmp.lt.s32.totalorder %s100_s23, %s100_s23 }
  0x12   :  { %v29_v4 = vadd.s32 %v28_v3, %v27_v2  ;;  %v37_v9 = vstv %s79_s16  ;;  %v39_v11 = vstv %s78_s17 }
  0x13   :  { %v42_v14 = vstv %s77_s18  ;;  %v45_v17 = vstv %s20_s0  ;;  %p107_p6 = por %p106_p5, %p105_p4 }
  0x14   :  { %v30_v5 = vsub.s32 255, %v29_v4 }
  0x15   :  { %p108_p7 = pnand %p107_p6, %p101_p3 }
  0x16   :  { %vm31_vm0 = vcmp.lt.s32.totalorder %v29_v4, %v30_v5 }
  0x17   :  { %v32_v6 = vsel %vm31_vm0, %v29_v4, %v30_v5 }
  0x18   :  { %vm33_vm1 = vcmp.gt.s32.totalorder %v32_v6, 0  ;;  %v80_v7 = vcvt.s32.f32 %v32_v6 }
  0x1a   :  { %v81_v8 = vsel %vm33_vm1, %v80_v7, 0.0 }
  0x1b   :  { %v36_v10 = vmul.f32 0.007874016, %v81_v8 }
  0x1d   :  { %v38_v12 = vmul.f32 %v37_v9, %v36_v10 }
  0x1f   :  { %v40_v13 = vadd.f32 %v39_v11, %v38_v12 }
  0x21   :  { %v41_v15 = vmul.f32 %v40_v13, %v36_v10 }
  0x23   :  { %v43_v16 = vadd.f32 %v42_v14, %v41_v15 }
  0x25   :  { %v44_v18 = vmul.f32 %v43_v16, %v36_v10 }
  0x27   :  { %v46_v19 = vadd.f32 %v45_v17, %v44_v18 }
  0x29   :  { %47 = vmax.xlane.f32.xlu0 %v46_v19 }
  0xb6   :  { %v48_v20 = vpop.xlane.xlu0 %47 }
  0xb7   :  { %v49_v21 = vrot.slane %v48_v20, 4 }
  0xb9   :  { %v50_v22 = vmax.f32 %v48_v20, %v49_v21 }
  0xbb   :  { %v51_v23 = vrot.slane %v50_v22, 2 }
  0xbd   :  { %v52_v24 = vmax.f32 %v50_v22, %v51_v23 }
  0xbf   :  { %v53_v25 = vrot.slane %v52_v24, 1 }
  0xc1   :  { %v54_v26 = vmax.f32 %v52_v24, %v53_v25 }
  0xc3   :  { %82 = vpush %v54_v26 }
  0xf4   :  { %s83_s19 = spop %82 }
  0xf5   :  { %v56_v27 = vstv %s83_s19 }
  0xf6   :  { %88 = vrcp.f32 %v56_v27 }
 0x100   :  { %v89_v28 = vpop.eup %88 }
 0x101   :  { %84 = vpush %v89_v28 }
 0x132   :  { %s85_s22 = spop %84 }
 0x133   :  { %v59_v29 = vstv %s85_s22 }
 0x134   :  { %v60_v30 = vmul.f32 %v59_v29, %v46_v19 }
 0x136   :  { %61 = vst [vmem:[#allocation5] sm:$0xff] %v60_v30 }
 0x137   :  { %111 = shalt.err (!%p108_p7)
}
 0x138   :  { %s112_s26 = scalar_lea.hbm %s163_s1, 128 }
 0x139   :  { %p113_p8 = scmp.ne.s32.totalorder %s163_s1, %s112_s26  ;;  %p116_p9 = scmp.lt.u32.totalorder %s112_s26, %s163_s1 }
 0x13b   :  { %p118_p10 = pnand %p116_p9, %p113_p8 }
 0x13d   :  { %121 = shalt.err (!%p118_p10)
}
 0x13e   :  { %71 = dma.vmem_to_hbm [thread:$0]  %s69_s21, 128, %s163_s1, [#allocation3]  }
 0x13f   :  { %124 = dma.done.wait [#allocation3], 128  }
 0x140   :  { %125 = vsyncadd [#allocation3], 4294967168 }
 0x141   :  { %75 = vsyncpa [#allocation3], 1 }
 0x142   :  { %76 = vsyncpa [#allocation4], 1 }

</bundles_post_ra>
